<compile_context>
chip_gen: v7x
topology: tpu7x:2x2x1
jax: 0.10.0
libtpu: 0.0.40
codegen_flags: <defaults>
</compile_context>

<pallas_src>
import functools

import jax
import jax.numpy as jnp
from jax.experimental import pallas as pl
from jax.experimental.pallas import tpu as pltpu

LANE = 128  # TPU vreg lane width


def _silu(x):
    # sigmoid(x) = 0.5*(tanh(x/2)+1): tanh runs on the EUP (separate bundle slot),
    # freeing VALU slots vs. a divide/Newton-based sigmoid.
    return x * (0.5 * (jnp.tanh(0.5 * x) + 1.0))


def _round_up(n, m):
    return ((n + m - 1) // m) * m


# ----------------------------------------------------------------------------- kernel
def safety_margin_kernel(z_ref, zc_ref, w1z_ref, w1c_ref, b1_ref,
                         w2_ref, b2_ref, w3_ref, b3_ref, o_ref):
    """Fused MLP: split first GEMM (z / z_const) -> SiLU -> GEMM -> SiLU -> GEMM."""
    z = z_ref[...].astype(jnp.float32)
    zc = zc_ref[...].astype(jnp.float32)

    # Layer 1: split GEMM replaces torch.cat((z, z_const), -1) @ W1.T
    h = (jnp.dot(z, w1z_ref[...], preferred_element_type=jnp.float32)
         + jnp.dot(zc, w1c_ref[...], preferred_element_type=jnp.float32)
         + b1_ref[...])
    h = _silu(h)

    # Layer 2
    h = _silu(jnp.dot(h, w2_ref[...], preferred_element_type=jnp.float32) + b2_ref[...])

    # Output layer: narrow (bm, d_out) store; no padded slab, no post-kernel slice.
    # NOTE: rows past the real batch in a partial trailing tile flow through the math
    # but are masked on store; adding any batch-wise reduction here would break that.
    y = jnp.dot(h, w3_ref[...], preferred_element_type=jnp.float32) + b3_ref[...]
    o_ref[...] = y.astype(o_ref.dtype)


# ----------------------------------------------------------------------------- wrapper
def prepare_params(params, z_dim):
    """Split w1 by (z, z_const) and zero-pad the *hidden* dims to multiples of 128.

    Zero padding is exact: padded hidden columns stay 0 through SiLU (silu(0)=0) and
    padded weight rows contribute nothing. The output layer is left at its true
    width d_out so the kernel stores exactly the needed bytes.
    """
    w1, b1, w2, b2, w3, b3 = params

    def pad_cols(a, n):
        return jnp.pad(a, ((0, 0), (0, n - a.shape[1])))

    def pad_rows(a, n):
        return jnp.pad(a, ((0, n - a.shape[0]), (0, 0)))

    h1 = _round_up(w1.shape[1], LANE)
    h2 = _round_up(w2.shape[1], LANE)

    w1z = pad_cols(w1[:z_dim], h1)
    w1c = pad_cols(w1[z_dim:], h1)
    b1p = pad_cols(b1, h1)
    w2p = pad_cols(pad_rows(w2, h1), h2)
    b2p = pad_cols(b2, h2)
    w3p = pad_rows(w3, h2)          # columns stay at d_out (narrow output)
    return (w1z, w1c, b1p, w2p, b2p, w3p, b3)


@functools.partial(jax.jit, static_argnames=("block_m",))
def safety_margin_forward(z, z_const, padded_params, block_m=512):
    """padded_params = prepare_params(...); returns (batch, d_out)."""
    w1z, w1c, b1, w2, b2, w3, b3 = padded_params
    batch, z_dim = z.shape
    zc_dim = z_const.shape[1]
    h1 = w1z.shape[1]
    h2 = w2.shape[1]
    d_out = w3.shape[1]

    # Batch tile: as large as block_m allows, but aim for >= 2 grid steps so a v7x
    # megacore can shard the "parallel" batch axis over both TensorCores.  Even at
    # bm=1024 the working set is only a few MiB, so VMEM never binds; large tiles
    # amortize the ~0.35 us per-grid-step overhead.  Partial trailing blocks are
    # masked by Pallas, so no wrapper-side padding of the activations is needed.
    if batch > 8:
        bm = min(block_m, _round_up(-(-batch // 2), 8))
    else:
        bm = 8
    grid = (pl.cdiv(batch, bm),)
    const = lambda i: (0, 0)  # weights/biases: one full resident block

    flops = 2 * batch * ((z_dim + zc_dim) * h1 + h1 * h2 + h2 * d_out)
    transcendentals = batch * (h1 + h2)
    bytes_accessed = 4 * (batch * (z_dim + zc_dim + d_out)
                          + w1z.size + w1c.size + b1.size
                          + w2.size + b2.size + w3.size + b3.size)

    out = pl.pallas_call(
        safety_margin_kernel,
        out_shape=jax.ShapeDtypeStruct((batch, d_out), z.dtype),
        grid_spec=pltpu.PrefetchScalarGridSpec(
            num_scalar_prefetch=0,
            grid=grid,
            in_specs=[
                pl.BlockSpec((bm, z_dim), lambda i: (i, 0)),
                pl.BlockSpec((bm, zc_dim), lambda i: (i, 0)),
                pl.BlockSpec(w1z.shape, const),
                pl.BlockSpec(w1c.shape, const),
                pl.BlockSpec(b1.shape, const),
                pl.BlockSpec(w2.shape, const),
                pl.BlockSpec(b2.shape, const),
                pl.BlockSpec(w3.shape, const),
                pl.BlockSpec(b3.shape, const),
            ],
            out_specs=pl.BlockSpec((bm, d_out), lambda i: (i, 0)),
        ),
        compiler_params=pltpu.CompilerParams(
            dimension_semantics=("parallel",),  # independent batch tiles -> both TCs on v7x
        ),
        cost_estimate=pl.CostEstimate(
            flops=int(flops),
            transcendentals=int(transcendentals),
            bytes_accessed=int(bytes_accessed),
        ),
    )(z, z_const, w1z, w1c, b1, w2, b2, w3, b3)
    return out


# ----------------------------------------------------------------------------- reference / init
def init_params(key, input_dim, hidden_dims, output_dim, dtype=jnp.float32):
    """Deterministic init mimicking PyTorch nn.Linear (uniform +/- 1/sqrt(fan_in)).

    Weights stored pre-transposed as (in, out); biases as (1, out)."""
    dims = [input_dim] + list(hidden_dims) + [output_dim]
    params = []
    for i in range(len(dims) - 1):
        fan_in, fan_out = dims[i], dims[i + 1]
        key, kw, kb = jax.random.split(key, 3)
        bound = 1.0 / (fan_in ** 0.5)
        w = jax.random.uniform(kw, (fan_in, fan_out), dtype, -bound, bound)
        b = jax.random.uniform(kb, (1, fan_out), dtype, -bound, bound)
        params.extend([w, b])
    return tuple(params)


def reference_forward(z, z_const, params):
    w1, b1, w2, b2, w3, b3 = params
    x = jnp.concatenate([z, z_const], axis=-1)
    h = x @ w1 + b1
    h = h * jax.nn.sigmoid(h)
    h = h @ w2 + b2
    h = h * jax.nn.sigmoid(h)
    return h @ w3 + b3


if __name__ == "__main__":
    key = jax.random.PRNGKey(0)
    k_params, k_z, k_zc = jax.random.split(key, 3)

    batch = 8
    z_dim, z_const_dim = 20, 12          # input_dim = 32
    hidden_dims = (64, 64)
    output_dim = 8

    params = init_params(k_params, z_dim + z_const_dim, hidden_dims, output_dim)
    padded_params = prepare_params(params, z_dim)

    z = jax.random.normal(k_z, (batch, z_dim), jnp.float32)
    z_const = jax.random.normal(k_zc, (batch, z_const_dim), jnp.float32)

    out = safety_margin_forward(z, z_const, padded_params)
    out = jax.block_until_ready(out)
    ref = reference_forward(z, z_const, params)
    assert out.shape == (batch, output_dim)
    assert jnp.allclose(out, ref, atol=1e-4, rtol=1e-4)

    # Second check: non-divisible batch exercises the >=2-step grid plus a masked
    # partial trailing tile (bm = round_up(ceil(200/2), 8) = 104 -> 2 grid steps).
    batch2 = 200
    z2 = jax.random.normal(jax.random.PRNGKey(1), (batch2, z_dim), jnp.float32)
    zc2 = jax.random.normal(jax.random.PRNGKey(2), (batch2, z_const_dim), jnp.float32)
    out2 = jax.block_until_ready(safety_margin_forward(z2, zc2, padded_params))
    ref2 = reference_forward(z2, zc2, params)
    assert out2.shape == (batch2, output_dim)
    assert jnp.allclose(out2, ref2, atol=1e-4, rtol=1e-4)

    print("KERNEL_OK")
</pallas_src>

<mosaic_0001>
module attributes {stable_mosaic.version = 11 : i64} {
  func.func @safety_margin_kernel(%arg0: i32, %arg1: memref<8x20xf32, #tpu.memory_space<vmem>>, %arg2: memref<8x12xf32, #tpu.memory_space<vmem>>, %arg3: memref<20x128xf32, #tpu.memory_space<vmem>>, %arg4: memref<12x128xf32, #tpu.memory_space<vmem>>, %arg5: memref<1x128xf32, #tpu.memory_space<vmem>>, %arg6: memref<128x128xf32, #tpu.memory_space<vmem>>, %arg7: memref<1x128xf32, #tpu.memory_space<vmem>>, %arg8: memref<128x8xf32, #tpu.memory_space<vmem>>, %arg9: memref<1x8xf32, #tpu.memory_space<vmem>>, %arg10: memref<8x8xf32, #tpu.memory_space<vmem>>) attributes {dimension_semantics = [#tpu.dimension_semantics<parallel>], iteration_bounds = array<i64: 1>, scalar_prefetch = 0 : i64, scratch_operands = 0 : i64, tpu.core_type = #tpu.core_type<tc>, window_params = [{transform_indices = @transform_0, window_bounds = array<i64: 8, 20>}, {transform_indices = @transform_1, window_bounds = array<i64: 8, 12>}, {pipeline_mode = #tpu.pipeline_mode<synchronous>, transform_indices = @transform_2, window_bounds = array<i64: 20, 128>}, {pipeline_mode = #tpu.pipeline_mode<synchronous>, transform_indices = @transform_3, window_bounds = array<i64: 12, 128>}, {pipeline_mode = #tpu.pipeline_mode<synchronous>, transform_indices = @transform_4, window_bounds = array<i64: 1, 128>}, {pipeline_mode = #tpu.pipeline_mode<synchronous>, transform_indices = @transform_5, window_bounds = array<i64: 128, 128>}, {pipeline_mode = #tpu.pipeline_mode<synchronous>, transform_indices = @transform_6, window_bounds = array<i64: 1, 128>}, {pipeline_mode = #tpu.pipeline_mode<synchronous>, transform_indices = @transform_7, window_bounds = array<i64: 128, 8>}, {pipeline_mode = #tpu.pipeline_mode<synchronous>, transform_indices = @transform_8, window_bounds = array<i64: 1, 8>}, {transform_indices = @transform_9, window_bounds = array<i64: 8, 8>}]} {
    %c0 = arith.constant 0 : index
    %c0_0 = arith.constant 0 : index
    %0 = vector.load %arg1[%c0, %c0_0] : memref<8x20xf32, #tpu.memory_space<vmem>>, vector<8x20xf32>
    %c0_1 = arith.constant 0 : index
    %c0_2 = arith.constant 0 : index
    %1 = vector.load %arg2[%c0_1, %c0_2] : memref<8x12xf32, #tpu.memory_space<vmem>>, vector<8x12xf32>
    %c0_3 = arith.constant 0 : index
    %c0_4 = arith.constant 0 : index
    %2 = vector.load %arg3[%c0_3, %c0_4] : memref<20x128xf32, #tpu.memory_space<vmem>>, vector<20x128xf32>
    %cst = arith.constant dense<0.000000e+00> : vector<8x128xf32>
    %3 = tpu.matmul %0, %2, %cst {dimension_numbers = #tpu.dot_dimension_numbers<[1], [0], [0], [1], [0, 0, 1, 1], [], []>} : vector<8x20xf32>, vector<20x128xf32>, vector<8x128xf32> -> vector<8x128xf32>
    %c0_5 = arith.constant 0 : index
    %c0_6 = arith.constant 0 : index
    %4 = vector.load %arg4[%c0_5, %c0_6] : memref<12x128xf32, #tpu.memory_space<vmem>>, vector<12x128xf32>
    %cst_7 = arith.constant dense<0.000000e+00> : vector<8x128xf32>
    %5 = tpu.matmul %1, %4, %cst_7 {dimension_numbers = #tpu.dot_dimension_numbers<[1], [0], [0], [1], [0, 0, 1, 1], [], []>} : vector<8x12xf32>, vector<12x128xf32>, vector<8x128xf32> -> vector<8x128xf32>
    %6 = arith.addf %3, %5 : vector<8x128xf32>
    %c0_8 = arith.constant 0 : index
    %c0_9 = arith.constant 0 : index
    %7 = vector.load %arg5[%c0_8, %c0_9] : memref<1x128xf32, #tpu.memory_space<vmem>>, vector<1x128xf32>
    %8 = vector.broadcast %7 : vector<1x128xf32> to vector<8x128xf32>
    %9 = arith.addf %6, %8 : vector<8x128xf32>
    %cst_10 = arith.constant 5.000000e-01 : f32
    %10 = vector.broadcast %cst_10 : f32 to vector<8x128xf32>
    %11 = arith.mulf %10, %9 : vector<8x128xf32>
    %12 = math.tanh %11 : vector<8x128xf32>
    %cst_11 = arith.constant 1.000000e+00 : f32
    %13 = vector.broadcast %cst_11 : f32 to vector<8x128xf32>
    %14 = arith.addf %12, %13 : vector<8x128xf32>
    %cst_12 = arith.constant 5.000000e-01 : f32
    %15 = vector.broadcast %cst_12 : f32 to vector<8x128xf32>
    %16 = arith.mulf %15, %14 : vector<8x128xf32>
    %17 = arith.mulf %9, %16 : vector<8x128xf32>
    %c0_13 = arith.constant 0 : index
    %c0_14 = arith.constant 0 : index
    %18 = vector.load %arg6[%c0_13, %c0_14] : memref<128x128xf32, #tpu.memory_space<vmem>>, vector<128x128xf32>
    %cst_15 = arith.constant dense<0.000000e+00> : vector<8x128xf32>
    %19 = tpu.matmul %17, %18, %cst_15 {dimension_numbers = #tpu.dot_dimension_numbers<[1], [0], [0], [1], [0, 0, 1, 1], [], []>} : vector<8x128xf32>, vector<128x128xf32>, vector<8x128xf32> -> vector<8x128xf32>
    %c0_16 = arith.constant 0 : index
    %c0_17 = arith.constant 0 : index
    %20 = vector.load %arg7[%c0_16, %c0_17] : memref<1x128xf32, #tpu.memory_space<vmem>>, vector<1x128xf32>
    %21 = vector.broadcast %20 : vector<1x128xf32> to vector<8x128xf32>
    %22 = arith.addf %19, %21 : vector<8x128xf32>
    %cst_18 = arith.constant 5.000000e-01 : f32
    %23 = vector.broadcast %cst_18 : f32 to vector<8x128xf32>
    %24 = arith.mulf %23, %22 : vector<8x128xf32>
    %25 = math.tanh %24 : vector<8x128xf32>
    %cst_19 = arith.constant 1.000000e+00 : f32
    %26 = vector.broadcast %cst_19 : f32 to vector<8x128xf32>
    %27 = arith.addf %25, %26 : vector<8x128xf32>
    %cst_20 = arith.constant 5.000000e-01 : f32
    %28 = vector.broadcast %cst_20 : f32 to vector<8x128xf32>
    %29 = arith.mulf %28, %27 : vector<8x128xf32>
    %30 = arith.mulf %22, %29 : vector<8x128xf32>
    %c0_21 = arith.constant 0 : index
    %c0_22 = arith.constant 0 : index
    %31 = vector.load %arg8[%c0_21, %c0_22] : memref<128x8xf32, #tpu.memory_space<vmem>>, vector<128x8xf32>
    %cst_23 = arith.constant dense<0.000000e+00> : vector<8x8xf32>
    %32 = tpu.matmul %30, %31, %cst_23 {dimension_numbers = #tpu.dot_dimension_numbers<[1], [0], [0], [1], [0, 0, 1, 1], [], []>} : vector<8x128xf32>, vector<128x8xf32>, vector<8x8xf32> -> vector<8x8xf32>
    %c0_24 = arith.constant 0 : index
    %c0_25 = arith.constant 0 : index
    %33 = vector.load %arg9[%c0_24, %c0_25] : memref<1x8xf32, #tpu.memory_space<vmem>>, vector<1x8xf32>
    %34 = vector.broadcast %33 : vector<1x8xf32> to vector<8x8xf32>
    %35 = arith.addf %32, %34 : vector<8x8xf32>
    %c0_26 = arith.constant 0 : index
    %c0_27 = arith.constant 0 : index
    %36 = vector.load %arg10[%c0_26, %c0_27] : memref<8x8xf32, #tpu.memory_space<vmem>>, vector<8x8xf32>
    tpu.vector_store %arg10[%c0_26, %c0_27], %35 {strides = array<i32>} : memref<8x8xf32, #tpu.memory_space<vmem>>, vector<8x8xf32>,
    return
  }
  func.func @transform_0(%arg0: i32) -> (i32, i32) {
    %c0_i32 = arith.constant 0 : i32
    %c0_i32_0 = arith.constant 0 : i32
    return %arg0, %c0_i32 : i32, i32
  }
  func.func @transform_1(%arg0: i32) -> (i32, i32) {
    %c0_i32 = arith.constant 0 : i32
    %c0_i32_0 = arith.constant 0 : i32
    return %arg0, %c0_i32 : i32, i32
  }
  func.func @transform_2(%arg0: i32) -> (i32, i32) {
    %c0_i32 = arith.constant 0 : i32
    %c0_i32_0 = arith.constant 0 : i32
    %c0_i32_1 = arith.constant 0 : i32
    return %c0_i32, %c0_i32_0 : i32, i32
  }
  func.func @transform_3(%arg0: i32) -> (i32, i32) {
    %c0_i32 = arith.constant 0 : i32
    %c0_i32_0 = arith.constant 0 : i32
    %c0_i32_1 = arith.constant 0 : i32
    return %c0_i32, %c0_i32_0 : i32, i32
  }
  func.func @transform_4(%arg0: i32) -> (i32, i32) {
    %c0_i32 = arith.constant 0 : i32
    %c0_i32_0 = arith.constant 0 : i32
    %c0_i32_1 = arith.constant 0 : i32
    return %c0_i32, %c0_i32_0 : i32, i32
  }
  func.func @transform_5(%arg0: i32) -> (i32, i32) {
    %c0_i32 = arith.constant 0 : i32
    %c0_i32_0 = arith.constant 0 : i32
    %c0_i32_1 = arith.constant 0 : i32
    return %c0_i32, %c0_i32_0 : i32, i32
  }
  func.func @transform_6(%arg0: i32) -> (i32, i32) {
    %c0_i32 = arith.constant 0 : i32
    %c0_i32_0 = arith.constant 0 : i32
    %c0_i32_1 = arith.constant 0 : i32
    return %c0_i32, %c0_i32_0 : i32, i32
  }
  func.func @transform_7(%arg0: i32) -> (i32, i32) {
    %c0_i32 = arith.constant 0 : i32
    %c0_i32_0 = arith.constant 0 : i32
    %c0_i32_1 = arith.constant 0 : i32
    return %c0_i32, %c0_i32_0 : i32, i32
  }
  func.func @transform_8(%arg0: i32) -> (i32, i32) {
    %c0_i32 = arith.constant 0 : i32
    %c0_i32_0 = arith.constant 0 : i32
    %c0_i32_1 = arith.constant 0 : i32
    return %c0_i32, %c0_i32_0 : i32, i32
  }
  func.func @transform_9(%arg0: i32) -> (i32, i32) {
    %c0_i32 = arith.constant 0 : i32
    %c0_i32_0 = arith.constant 0 : i32
    return %arg0, %c0_i32 : i32, i32
  }
}

</mosaic_0001>

<bundles_post_ra>
// kernel: safety_margin_forward.1
= control target key start
LH: loop header
LB: loop body
LE: loop exit
PB: predicated region body
PF: predicated region fallthrough
CT: control target
= control target key end

     0   :  { %14 = vsyncpa [#allocation3], 0  ;;  %s997_s0 = inlined_call_operand.hbm [shape: f32[8,20], index: 0, kind: input, shape index: {}]   ;;  %s998_s1 = inlined_call_operand.hbm [shape: f32[8,12], index: 1, kind: input, shape index: {}]   ;;  %s999_s2 = inlined_call_operand.vmem [shape: f32[20,128], index: 2, kind: input, shape index: {}]   ;;  %s1000_s3 = inlined_call_operand.hbm [shape: f32[12,128], index: 3, kind: input, shape index: {}]   ;;  %s1001_s4 = inlined_call_operand.vmem [shape: f32[1,128], index: 4, kind: input, shape index: {}]   ;;  %s1002_s5 = inlined_call_operand.vmem [shape: f32[128,128], index: 5, kind: input, shape index: {}]   ;;  %s1003_s6 = inlined_call_operand.vmem [shape: f32[1,128], index: 6, kind: input, shape index: {}]   ;;  %s1004_s7 = inlined_call_operand.vmem [shape: f32[128,8], index: 7, kind: input, shape index: {}]   ;;  %s1005_s8 = inlined_call_operand.vmem [shape: f32[1,8], index: 8, kind: input, shape index: {}]   ;;  %s1006_s9 = inlined_call_operand.hbm [shape: f32[8,8], index: 9, kind: output, shape index: {}]  }
   0x1   :  { %15 = vsyncpa [#allocation6], 0 }
   0x2   :  { %16 = vsyncpa [#allocation4], 0  ;;  %s751_s30 = smov [#allocation5]   ;;  %s752_s11 = smov [#allocation2]  }
   0x3   :  { %s33_s10 = sshll.u32 %s751_s30, 4  ;;  %s23_s12 = sshll.u32 %s752_s11, 4  ;;  %s34_s10 = int_to_ptr.vmem [resolvable:$true] %s33_s10  ;;  %s24_s12 = int_to_ptr.vmem [resolvable:$true] %s23_s12 }
   0x4   :  { %s657_s15 = scalar_lea.hbm %s998_s1, 128 }
   0x5   :  { %p658_p0 = scmp.ne.s32.totalorder %s998_s1, %s657_s15  ;;  %p661_p1 = scmp.lt.u32.totalorder %s657_s15, %s998_s1 }
   0x7   :  { %p663_p2 = pnand %p661_p1, %p658_p0 }
   0x9   :  { %666 = shalt.err (!%p663_p2)
}
   0xa   :  { %s667_s20 = scalar_lea.vmem %s34_s10, 128  ;;  %p672_p4 = scmp.lt.s32.totalorder %s34_s10, %s34_s10 }
   0xb   :  { %p668_p3 = scmp.ne.s32.totalorder %s34_s10, %s667_s20  ;;  %p673_p5 = scmp.lt.s32.totalorder %s667_s20, %s667_s20 }
   0xd   :  { %p674_p6 = por %p673_p5, %p672_p4 }
   0xf   :  { %p675_p7 = pnand %p674_p6, %p668_p3 }
  0x11   :  { %678 = shalt.err (!%p675_p7)
}
  0x12   :  { %36 = dma.hbm_to_vmem [thread:$0]  %s998_s1, 128, %s34_s10, [#allocation6]  }
  0x13   :  { %s679_s25 = scalar_lea.hbm %s997_s0, 128 }
  0x14   :  { %p680_p8 = scmp.ne.s32.totalorder %s997_s0, %s679_s25  ;;  %p683_p9 = scmp.lt.u32.totalorder %s679_s25, %s997_s0 }
  0x16   :  { %p685_p10 = pnand %p683_p9, %p680_p8 }
  0x18   :  { %688 = shalt.err (!%p685_p10)
}
  0x19   :  { %s689_s30 = scalar_lea.vmem %s24_s12, 128  ;;  %p694_p12 = scmp.lt.s32.totalorder %s24_s12, %s24_s12 }
  0x1a   :  { %p690_p11 = scmp.ne.s32.totalorder %s24_s12, %s689_s30  ;;  %p695_p13 = scmp.lt.s32.totalorder %s689_s30, %s689_s30 }
  0x1c   :  { %p696_p0 = por %p695_p13, %p694_p12 }
  0x1e   :  { %p697_p1 = pnand %p696_p0, %p690_p11 }
  0x20   :  { %700 = shalt.err (!%p697_p1)
}
  0x21   :  { %26 = dma.hbm_to_vmem [thread:$0]  %s997_s0, 128, %s24_s12, [#allocation3]  }
  0x22   :  { %s753_s11 = smov [#allocation7]   ;;  %s701_s16 = scalar_lea.hbm %s1000_s3, 256 }
  0x23   :  { %s44_s13 = sshll.u32 %s753_s11, 4  ;;  %p702_p2 = scmp.ne.s32.totalorder %s1000_s3, %s701_s16  ;;  %s45_s13 = int_to_ptr.vmem [resolvable:$true] %s44_s13 }
  0x24   :  { %p705_p3 = scmp.lt.u32.totalorder %s701_s16, %s1000_s3 }
  0x26   :  { %p707_p4 = pnand %p705_p3, %p702_p2 }
  0x28   :  { %710 = shalt.err (!%p707_p4)
}
  0x29   :  { %s711_s21 = scalar_lea.vmem %s45_s13, 256  ;;  %p716_p6 = scmp.lt.s32.totalorder %s45_s13, %s45_s13 }
  0x2a   :  { %p712_p5 = scmp.ne.s32.totalorder %s45_s13, %s711_s21  ;;  %p717_p7 = scmp.lt.s32.totalorder %s711_s21, %s711_s21 }
  0x2c   :  { %p718_p8 = por %p717_p7, %p716_p6 }
  0x2e   :  { %p719_p9 = pnand %p718_p8, %p712_p5 }
  0x30   :  { %722 = shalt.err (!%p719_p9)
}
  0x31   :  { %s754_s0 = smov 128   ;;  %s755_s12 = smov 8  }
  0x32   :  { %50 = dma.hbm_to_vmem [thread:$0]  %s1000_s3, 256, %s45_s13, [#allocation6], %s754_s0, %s754_s0, %s755_s12  }
  0x33   :  { %745 = dma.done.wait [#allocation3], 128  }
  0x34   :  { %746 = vsyncadd [#allocation3], 4294967168 }
  0x35   :  { %747 = dma.done.wait [#allocation6], 384  }
  0x36   :  { %748 = vsyncadd [#allocation6], 4294966912  ;;  %v756_v0 = vmov 0.0|0.0   ;;  %vm757_vm0 = vmmov 0   ;;  %v758_v1 = vmov 0.0   ;;  %vm81_vm1 = vcmask 1043456  }
  0x37   :  { %592 = vmatprep.subr.bf16.mxu1 %v756_v0  ;;  %588 = vmatprep.subr.bf16.mxu0 %v756_v0  ;;  %v72_v2 = vld [vmem:[%s999_s2] sm:$0xff]  ;;  %v73_v3 = vld [vmem:[%s999_s2 + $0x8] sm:$0xff]  ;;  %v75_v4 = vld [vmem:[#allocation7] sm:$0xff]  ;;  %vm759_vm2 = vmmov 1   ;;  %vm77_vm4 = vcmask 97280   ;;  %vm155_vm5 = vcmask 162816  }
  0x38   :  { %506 = vmatprep.mubr.msk.f32.mxu0 %vm757_vm0, %v758_v1  ;;  %515 = vmatprep.mubr.msk.f32.mxu1 %vm757_vm0, %v758_v1  ;;  %v593_v5 = vpack.c.bf16 %v73_v3, %v72_v2  ;;  %v76_v6 = vld [vmem:[#allocation7 + $0x8] sm:$0xf]  ;;  %vm590_vm3 = vmpackc.low %vm81_vm1, %vm759_vm2  ;;  %v245_v8 = vld [vmem:[%s1002_s5] sm:$0xff]  ;;  %vm436_vm6 = vcmask 64512  }
  0x39   :  { %v589_v7 = vpack.c.bf16 %v76_v6, %v75_v4  ;;  %v246_v9 = vld [vmem:[%s1002_s5 + $0x8] sm:$0xff]  ;;  %v74_v11 = vld [vmem:[%s999_s2 + $0x10] sm:$0xf]  ;;  %v70_v13 = vld [vmem:[#allocation2] sm:$0xff] }
  0x3a   :  { %594 = vmatpush3.bf16.msra.mxu1 %v593_v5  ;;  %v71_v10 = vld [vmem:[#allocation5] sm:$0xff]  ;;  %v596_v12 = vpack.c.bf16 %v246_v9, %v245_v8  ;;  %v247_v14 = vld [vmem:[%s1002_s5 + $0x10] sm:$0xff]  ;;  %v248_v15 = vld [vmem:[%s1002_s5 + $0x18] sm:$0xff] }
  0x3b   :  { %591 = vmatpush3.bf16.msk.msra.mxu0 %vm590_vm3, %v589_v7  ;;  %513 = vmatprep.subr.mxu1 %v758_v1  ;;  %v599_v16 = vpack.c.bf16 %v248_v15, %v247_v14  ;;  %v249_v17 = vld [vmem:[%s1002_s5 + $0x20] sm:$0xff]  ;;  %v250_v18 = vld [vmem:[%s1002_s5 + $0x28] sm:$0xff]  ;;  %v251_v20 = vld [vmem:[%s1002_s5 + $0x30] sm:$0xff] }
  0x3c   :  { %595 = vmatprep.subr.bf16.mxu0 %v756_v0  ;;  %v602_v19 = vpack.c.bf16 %v250_v18, %v249_v17  ;;  %v252_v21 = vld [vmem:[%s1002_s5 + $0x38] sm:$0xff]  ;;  %v253_v23 = vld [vmem:[%s1002_s5 + $0x40] sm:$0xff]  ;;  %v254_v24 = vld [vmem:[%s1002_s5 + $0x48] sm:$0xff] }
  0x3d   :  { %v605_v22 = vpack.c.bf16 %v252_v21, %v251_v20  ;;  %v608_v25 = vpack.c.bf16 %v254_v24, %v253_v23  ;;  %v255_v26 = vld [vmem:[%s1002_s5 + $0x50] sm:$0xff]  ;;  %v256_v27 = vld [vmem:[%s1002_s5 + $0x58] sm:$0xff]  ;;  %v257_v29 = vld [vmem:[%s1002_s5 + $0x60] sm:$0xff] }
  0x3e   :  { %507 = vmatmul.mubr.msk.f32.vlgmr.msra.gmra.mrb[0].mxu0 %vm77_vm4, %v71_v10  ;;  %514 = vmatpush3.msk.msra.mxu1 %vm81_vm1, %v74_v11  ;;  %v611_v28 = vpack.c.bf16 %v256_v27, %v255_v26  ;;  %v258_v30 = vld [vmem:[%s1002_s5 + $0x68] sm:$0xff]  ;;  %v259_v32 = vld [vmem:[%s1002_s5 + $0x70] sm:$0xff]  ;;  %v260_v33 = vld [vmem:[%s1002_s5 + $0x78] sm:$0xff] }
  0x3f   :  { %516 = vmatmul.mubr.msk.f32.vlgmr.msra.gmra.mrb[0].mxu1 %vm155_vm5, %v70_v13  ;;  %597 = vmatpush3.bf16.msra.mxu0 %v596_v12  ;;  %v614_v31 = vpack.c.bf16 %v258_v30, %v257_v29  ;;  %v617_v34 = vpack.c.bf16 %v260_v33, %v259_v32  ;;  %v343_v35 = vld [vmem:[%s1004_s7] sm:$0xff]  ;;  %v344_v36 = vld [vmem:[%s1004_s7 + $0x8] sm:$0xff]  ;;  %v345_v37 = vld [vmem:[%s1004_s7 + $0x10] sm:$0xff] }
  0x40   :  { %598 = vmatprep.subr.bf16.mxu0 %v756_v0  ;;  %550 = vmatprep.mubr.msk.f32.mxu0 %vm757_vm0, %v758_v1  ;;  %v620_v38 = vpack.c.bf16 %v344_v36, %v343_v35  ;;  %v346_v39 = vld [vmem:[%s1004_s7 + $0x18] sm:$0xff]  ;;  %v347_v41 = vld [vmem:[%s1004_s7 + $0x20] sm:$0xff]  ;;  %v348_v42 = vld [vmem:[%s1004_s7 + $0x28] sm:$0xff] }
  0x41   :  { %619 = vmatprep.subr.bf16.mxu1 %v756_v0  ;;  %585 = vmatprep.mubr.msk.f32.mxu1 %vm757_vm0, %v758_v1  ;;  %v623_v40 = vpack.c.bf16 %v346_v39, %v345_v37  ;;  %v626_v43 = vpack.c.bf16 %v348_v42, %v347_v41  ;;  %v458_v47 = vld [vmem:[%s1001_s4] ss:$0 sm:$0xff]  ;;  %v349_v56 = vld [vmem:[%s1004_s7 + $0x30] sm:$0xff]  ;;  %v350_v57 = vld [vmem:[%s1004_s7 + $0x38] sm:$0xff] }
  0x42   :  { %621 = vmatpush3.bf16.msra.mxu1 %v620_v38  ;;  %v629_v58 = vpack.c.bf16 %v350_v57, %v349_v56  ;;  %v351_v59 = vld [vmem:[%s1004_s7 + $0x40] sm:$0xff]  ;;  %v352_v60 = vld [vmem:[%s1004_s7 + $0x48] sm:$0xff]  ;;  %v353_v62 = vld [vmem:[%s1004_s7 + $0x50] sm:$0xff] }
  0x43   :  { %600 = vmatpush3.bf16.msra.mxu0 %v599_v16  ;;  %622 = vmatprep.subr.bf16.mxu1 %v756_v0  ;;  %v632_v61 = vpack.c.bf16 %v352_v60, %v351_v59  ;;  %v354_v63 = vld [vmem:[%s1004_s7 + $0x58] sm:$0xff]  ;;  %v355_v2 = vld [vmem:[%s1004_s7 + $0x60] sm:$0xff]  ;;  %v356_v3 = vld [vmem:[%s1004_s7 + $0x68] sm:$0xff] }
  0x44   :  { %601 = vmatprep.subr.bf16.mxu0 %v756_v0  ;;  %v635_v1 = vpack.c.bf16 %v354_v63, %v353_v62  ;;  %v638_v4 = vpack.c.bf16 %v356_v3, %v355_v2  ;;  %v357_v5 = vld [vmem:[%s1004_s7 + $0x70] sm:$0xff]  ;;  %v358_v6 = vld [vmem:[%s1004_s7 + $0x78] sm:$0xff]  ;;  %v459_v8 = vld [vmem:[%s1003_s6] ss:$0 sm:$0xff]  ;;  %s760_s7 = smov [#allocation8]  }
  0x45   :  { %v641_v7 = vpack.c.bf16 %v358_v6, %v357_v5  ;;  %v460_v16 = vld [vmem:[%s1005_s8] ss:$0 sm:$0xff]  ;;  %s444_s22 = sshll.u32 %s760_s7, 4  ;;  %s445_s22 = int_to_ptr.vmem [resolvable:$true] %s444_s22 }
  0x46   :  { %624 = vmatpush3.bf16.msra.mxu1 %v623_v40  ;;  %s723_s6 = scalar_lea.vmem %s445_s22, 128  ;;  %p728_p11 = scmp.lt.s32.totalorder %s445_s22, %s445_s22 }
  0x47   :  { %603 = vmatpush3.bf16.msra.mxu0 %v602_v19  ;;  %625 = vmatprep.subr.bf16.mxu1 %v756_v0  ;;  %p724_p10 = scmp.ne.s32.totalorder %s445_s22, %s723_s6  ;;  %p729_p12 = scmp.lt.s32.totalorder %s723_s6, %s723_s6 }
  0x48   :  { %604 = vmatprep.subr.bf16.mxu0 %v756_v0 }
  0x49   :  { %p730_p13 = por %p729_p12, %p728_p11 }
  0x4a   :  { %627 = vmatpush3.bf16.msra.mxu1 %v626_v43 }
  0x4b   :  { %606 = vmatpush3.bf16.msra.mxu0 %v605_v22  ;;  %628 = vmatprep.subr.bf16.mxu1 %v756_v0  ;;  %p731_p0 = pnand %p730_p13, %p724_p10 }
  0x4c   :  { %607 = vmatprep.subr.bf16.mxu0 %v756_v0 }
  0x4e   :  { %630 = vmatpush3.bf16.msra.mxu1 %v629_v58 }
  0x4f   :  { %609 = vmatpush3.bf16.msra.mxu0 %v608_v25  ;;  %631 = vmatprep.subr.bf16.mxu1 %v756_v0 }
  0x50   :  { %610 = vmatprep.subr.bf16.mxu0 %v756_v0 }
  0x52   :  { %633 = vmatpush3.bf16.msra.mxu1 %v632_v61 }
  0x53   :  { %612 = vmatpush3.bf16.msra.mxu0 %v611_v28  ;;  %634 = vmatprep.subr.bf16.mxu1 %v756_v0 }
  0x54   :  { %613 = vmatprep.subr.bf16.mxu0 %v756_v0 }
  0x56   :  { %636 = vmatpush3.bf16.msra.mxu1 %v635_v1 }
  0x57   :  { %615 = vmatpush3.bf16.msra.mxu0 %v614_v31  ;;  %637 = vmatprep.subr.bf16.mxu1 %v756_v0 }
  0x58   :  { %616 = vmatprep.subr.bf16.mxu0 %v756_v0 }
  0x5a   :  { %639 = vmatpush3.bf16.msra.mxu1 %v638_v4 }
  0x5b   :  { %618 = vmatpush3.bf16.msra.mxu0 %v617_v34  ;;  %640 = vmatprep.subr.bf16.mxu1 %v756_v0 }
  0x5e   :  { %642 = vmatpush3.bf16.msra.mxu1 %v641_v7 }
 0x111   :  { %v151_v44 = vpop.f32.mrb[0].mxu0 }
 0x112   :  { %v508_v45 = vpop.f32.mrb[1].mxu0  ;;  %v228_v46 = vpop.f32.mrb[0].mxu1 }
 0x113   :  { %v229_v48 = vadd.f32 %v228_v46, %v151_v44  ;;  %v517_v49 = vpop.f32.mrb[1].mxu1 }
 0x115   :  { %v239_v50 = vadd.f32 %v458_v47, %v229_v48 }
 0x117   :  { %v240_v51 = vmul.f32 0.5, %v239_v50 }
 0x119   :  { %653 = vtanh.f32 %v240_v51 }
 0x123   :  { %v654_v52 = vpop.eup %653 }
 0x124   :  { %v242_v53 = vadd.f32 1.0, %v654_v52 }
 0x126   :  { %v243_v54 = vmul.f32 0.5, %v242_v53 }
 0x128   :  { %v244_v55 = vmul.f32 %v243_v54, %v239_v50 }
 0x12a   :  { %551 = vmatmul.mubr.f32.vlgmr.msra.gmra.mrb[2].mxu0 %v244_v55 }
 0x1fd   :  { %v334_v9 = vpop.f32.mrb[2].mxu0 }
 0x1fe   :  { %v335_v10 = vadd.f32 %v459_v8, %v334_v9  ;;  %v552_v11 = vpop.f32.mrb[3].mxu0 }
 0x200   :  { %v338_v12 = vmul.f32 0.5, %v335_v10 }
 0x202   :  { %655 = vtanh.f32 %v338_v12 }
 0x20c   :  { %v656_v0 = vpop.eup %655 }
 0x20d   :  { %v340_v13 = vadd.f32 1.0, %v656_v0 }
 0x20f   :  { %v341_v14 = vmul.f32 0.5, %v340_v13 }
 0x211   :  { %v342_v15 = vmul.f32 %v341_v14, %v335_v10 }
 0x213   :  { %586 = vmatmul.mubr.f32.vlgmr.msra.gmra.mrb[2].mxu1 %v342_v15 }
 0x2e6   :  { %v432_v17 = vpop.f32.mrb[2].mxu1 }
 0x2e7   :  { %v433_v18 = vadd.f32 %v460_v16, %v432_v17  ;;  %v587_v19 = vpop.f32.mrb[3].mxu1 }
 0x2e9   :  { %437 = vst.msk [vmem:[#allocation8] sm:$0xff] %vm436_vm6, %v433_v18 }
 0x2ea   :  { %734 = shalt.err (!%p731_p0)
}
 0x2eb   :  { %s735_s25 = scalar_lea.hbm %s1006_s9, 128 }
 0x2ec   :  { %p736_p1 = scmp.ne.s32.totalorder %s1006_s9, %s735_s25  ;;  %p739_p2 = scmp.lt.u32.totalorder %s735_s25, %s1006_s9 }
 0x2ee   :  { %p741_p3 = pnand %p739_p2, %p736_p1 }
 0x2f0   :  { %744 = shalt.err (!%p741_p3)
}
 0x2f1   :  { %447 = dma.vmem_to_hbm [thread:$0]  %s445_s22, 128, %s1006_s9, [#allocation4]  }
 0x2f2   :  { %749 = dma.done.wait [#allocation4], 128  }
 0x2f3   :  { %750 = vsyncadd [#allocation4], 4294967168 }
 0x2f4   :  { %451 = vsyncpa [#allocation3], 1 }
 0x2f5   :  { %452 = vsyncpa [#allocation6], 1 }
 0x2f6   :  { %453 = vsyncpa [#allocation4], 1 }

</bundles_post_ra>
